<compile_context>
chip_gen: v7x
topology: tpu7x:2x2x1
jax: 0.10.0
libtpu: 0.0.40
codegen_flags: <defaults>
</compile_context>

<pallas_src>
import functools

import jax
import jax.numpy as jnp
import numpy as np
from jax import lax
from jax.experimental import pallas as pl
from jax.experimental.pallas import tpu as pltpu


def _mha_token_kernel(q_ref, k_ref, m_ref, sel_ref, wq_ref, wkv_ref, wo_ref,
                      bo_ref, o_ref, *, num_heads, sent_num, token_num, scale,
                      out_pad):
    """One grid step handles one batch element: all sentences, heads, queries."""
    q_num, hidden = q_ref.shape[1], q_ref.shape[2]
    all_dim = wq_ref.shape[1]
    S, T, H = sent_num, token_num, num_heads
    HQ = H * q_num

    # ---- loads; MXU operands cast to bf16, everything else stays f32 -------
    q_in = q_ref[...].reshape(q_num, hidden).astype(jnp.bfloat16)      # (Q, HID)
    kv_in = k_ref[...].reshape(S * T, hidden).astype(jnp.bfloat16)     # (S*T, HID)
    madd = m_ref[...].reshape(1, S * T) * -10000.0                     # (1, S*T) f32
    sel = sel_ref[...]                                                 # (H*Q, A) 0/1 f32

    # ---- projections (no bias): two MXU matmuls covering all sentences -----
    q_proj = jnp.dot(q_in, wq_ref[...], preferred_element_type=jnp.float32)     # (Q, A)
    kv_proj = jnp.dot(kv_in, wkv_ref[...], preferred_element_type=jnp.float32)  # (S*T, A)

    # ---- head batching via a block-diagonal query operand ------------------
    # q_bd[h*Q + q, :] keeps only head-h columns of q_proj[q, :] (zero elsewhere),
    # so one (H*Q, A) x (A, S*T) matmul yields every per-head score at once.
    # broadcast_to + reshape = cheap sublane replication (no concat relayout).
    q_rep = jnp.broadcast_to(q_proj[None], (H, q_num, all_dim)).reshape(HQ, all_dim)
    q_bd = (q_rep * sel).astype(jnp.bfloat16)                          # (H*Q, A)
    kv_bf = kv_proj.astype(jnp.bfloat16)                               # (S*T, A)

    # ---- fused scores: one MXU push for ALL sentences; contract last dims
    #      of both operands -> no kv transpose materialized ------------------
    sc = lax.dot_general(q_bd, kv_bf, (((1,), (1,)), ((), ())),
                         preferred_element_type=jnp.float32)           # (H*Q, S*T)
    sc = sc * scale + madd                                             # f32 mask add

    wo = wo_ref[...]                                                   # (A, HID) bf16
    out_parts = []
    for s in range(S):                                                 # static unroll
        sc_s = sc[:, s * T:(s + 1) * T]                                # (H*Q, T)
        # Per-sentence softmax in f32. Row-max kept so fully-masked sentences
        # degrade to uniform attention (same as the reference), no NaNs.
        sc_s = sc_s - jnp.max(sc_s, axis=-1, keepdims=True)
        p = jnp.exp(sc_s)
        p = p / jnp.sum(p, axis=-1, keepdims=True)                     # exact divide

        kv_s = kv_bf[s * T:(s + 1) * T, :]                             # (T, A) aligned
        ctx_full = jnp.dot(p.astype(jnp.bfloat16), kv_s,
                           preferred_element_type=jnp.float32)         # (H*Q, A)
        # Keep only each row's own-head columns, collapse head-replicated rows.
        ctx_m = ctx_full * sel
        ctx = ctx_m[0:q_num, :]
        for h in range(1, H):
            ctx = ctx + ctx_m[h * q_num:(h + 1) * q_num, :]            # (Q, A)

        out_parts.append(jnp.dot(ctx.astype(jnp.bfloat16), wo,
                                 preferred_element_type=jnp.float32))  # (Q, HID)

    if out_pad:
        out_parts.append(jnp.zeros((q_num, out_pad), jnp.float32))     # lane-dense pad

    # (Q, S*HID + pad) slab already in [q, s, hid] order; bias added ONCE.
    out_full = jnp.concatenate(out_parts, axis=-1) + bo_ref[...]
    o_ref[...] = out_full.reshape(o_ref.shape).astype(o_ref.dtype)


def mha_token_no_layernorm(ini_q, ini_k, mask, wq, wkv, wo, bo, *, num_heads):
    """Pallas implementation of MHATokenNoLayerNorm.forward (eval mode)."""
    B, Q, HID = ini_q.shape
    _, S, T, _ = ini_k.shape
    A = wq.shape[1]
    head_dim = A // num_heads
    scale = 1.0 / (head_dim ** 0.5)

    out_w = S * HID
    out_pad = (-out_w) % 128          # pad output slab to a full-lane multiple
    OUT_W = out_w + out_pad

    # Wrapper-side layout plumbing: contiguous reshapes only (no transposes).
    k_flat = ini_k.reshape(B, S * T, HID)
    m_flat = mask.reshape(B, 1, S * T).astype(jnp.float32)

    # Parameters: bf16 weights for the MXU; bias stays f32, tiled (and padded)
    # to the output slab width so the kernel adds it exactly once.
    wq_bf = wq.astype(jnp.bfloat16)
    wkv_bf = wkv.astype(jnp.bfloat16)
    wo_bf = wo.astype(jnp.bfloat16)
    bo_tiled = jnp.tile(bo.reshape(1, HID), (1, S))
    if out_pad:
        bo_tiled = jnp.concatenate(
            [bo_tiled, jnp.zeros((1, out_pad), jnp.float32)], axis=-1)

    # Block-diagonal head selector (H*Q, A), precomputed host-side as 0/1 f32.
    HQ = num_heads * Q
    row_head = np.arange(HQ)[:, None] // Q
    col_head = np.arange(A)[None, :] // head_dim
    sel = jnp.asarray((row_head == col_head).astype(np.float32))

    kernel = functools.partial(
        _mha_token_kernel, num_heads=num_heads, sent_num=S, token_num=T,
        scale=scale, out_pad=out_pad)

    flops = B * (
        2 * Q * HID * A                      # Q projection
        + 2 * S * T * HID * A                # KV projection
        + 2 * HQ * A * S * T                 # fused scores
        + S * (2 * HQ * T * A                # context
               + 2 * Q * A * HID))           # output projection
    transcendentals = B * S * HQ * T         # exp
    bytes_accessed = (4 * (ini_q.size + k_flat.size + m_flat.size + sel.size
                           + bo_tiled.size + B * Q * OUT_W)
                      + 2 * (wq.size + wkv.size + wo.size))

    out_flat = pl.pallas_call(
        kernel,
        out_shape=jax.ShapeDtypeStruct((B, Q, OUT_W), jnp.float32),
        grid_spec=pltpu.PrefetchScalarGridSpec(
            num_scalar_prefetch=0,
            grid=(B,),
            in_specs=[
                pl.BlockSpec((1, Q, HID), lambda b: (b, 0, 0)),        # ini_q
                pl.BlockSpec((1, S * T, HID), lambda b: (b, 0, 0)),    # ini_k (flat)
                pl.BlockSpec((1, 1, S * T), lambda b: (b, 0, 0)),      # mask (flat)
                pl.BlockSpec((HQ, A), lambda b: (0, 0)),               # head selector
                pl.BlockSpec((HID, A), lambda b: (0, 0)),              # Wq  (bf16)
                pl.BlockSpec((HID, A), lambda b: (0, 0)),              # Wkv (bf16)
                pl.BlockSpec((A, HID), lambda b: (0, 0)),              # Wo  (bf16)
                pl.BlockSpec((1, OUT_W), lambda b: (0, 0)),            # bo (tiled)
            ],
            out_specs=pl.BlockSpec((1, Q, OUT_W), lambda b: (b, 0, 0)),
        ),
        compiler_params=pltpu.CompilerParams(
            dimension_semantics=("parallel",)),
        cost_estimate=pl.CostEstimate(
            flops=int(flops),
            transcendentals=int(transcendentals),
            bytes_accessed=int(bytes_accessed)),
    )(ini_q, k_flat, m_flat, sel, wq_bf, wkv_bf, wo_bf, bo_tiled)

    # Drop lane padding (tiny slice) and reshape to (B, Q, S, HID) — no transpose.
    out = out_flat[:, :, :out_w] if out_pad else out_flat
    return out.reshape(B, Q, S, HID)


def _reference(ini_q, ini_k, mask, wq, wkv, wo, bo, num_heads):
    B, Q, HID = ini_q.shape
    _, S, T, _ = ini_k.shape
    A = wq.shape[1]
    D = A // num_heads
    q = (ini_q @ wq).reshape(B, Q, num_heads, D)
    kv = (ini_k @ wkv).reshape(B, S, T, num_heads, D)
    scores = jnp.einsum('bqhd,bsthd->bhqst', q, kv) * (1.0 / D ** 0.5)
    scores = scores + mask[:, None, None, :, :] * -10000.0
    alpha = jax.nn.softmax(scores, axis=4)
    res = jnp.einsum('bhqst,bsthd->bqshd', alpha, kv).reshape(B, Q, S, A)
    return res @ wo + bo


if __name__ == "__main__":
    # Small config consistent with BertConfig(hidden_size=32, num_attention_heads=4)
    batch, q_num, s_num, t_num = 2, 8, 3, 16
    hidden, num_heads = 32, 4
    all_dim = hidden  # head_num * head_dim

    key = jax.random.PRNGKey(0)
    k1, k2, k3, k4, k5, k6, k7 = jax.random.split(key, 7)

    ini_q = jax.random.normal(k1, (batch, q_num, hidden), dtype=jnp.float32)
    ini_k = jax.random.normal(k2, (batch, s_num, t_num, hidden), dtype=jnp.float32)
    mask = (jax.random.uniform(k3, (batch, s_num, t_num)) < 0.25).astype(jnp.float32)

    # Deterministic parameter init (Linear weights stored as [in, out]).
    wq = jax.random.normal(k4, (hidden, all_dim), dtype=jnp.float32) * 0.05
    wkv = jax.random.normal(k5, (hidden, all_dim), dtype=jnp.float32) * 0.05
    wo = jax.random.normal(k6, (all_dim, hidden), dtype=jnp.float32) * 0.05
    bo = jax.random.normal(k7, (hidden,), dtype=jnp.float32) * 0.05

    out = mha_token_no_layernorm(ini_q, ini_k, mask, wq, wkv, wo, bo,
                                 num_heads=num_heads)
    out = jax.block_until_ready(out)

    ref = _reference(ini_q, ini_k, mask, wq, wkv, wo, bo, num_heads)
    assert out.shape == (batch, q_num, s_num, hidden), out.shape
    # Tolerance reflects bf16 MXU operands (per perf review) vs. the pure-f32
    # reference; softmax itself is f32 with an exact divide, so the structure
    # of the result (masking, normalization) matches the PyTorch module.
    np.testing.assert_allclose(np.asarray(out), np.asarray(ref),
                               rtol=2e-2, atol=1e-2)
    print("KERNEL_OK")
</pallas_src>

<mosaic_0001>
module attributes {stable_mosaic.version = 11 : i64} {
  func.func @_mha_token_kernel(%arg0: i32, %arg1: memref<1x8x32xf32, #tpu.memory_space<vmem>>, %arg2: memref<1x48x32xf32, #tpu.memory_space<vmem>>, %arg3: memref<1x1x48xf32, #tpu.memory_space<vmem>>, %arg4: memref<32x32xf32, #tpu.memory_space<vmem>>, %arg5: memref<32x32xbf16, #tpu.memory_space<vmem>>, %arg6: memref<32x32xbf16, #tpu.memory_space<vmem>>, %arg7: memref<32x32xbf16, #tpu.memory_space<vmem>>, %arg8: memref<1x128xf32, #tpu.memory_space<vmem>>, %arg9: memref<1x8x128xf32, #tpu.memory_space<vmem>>) attributes {dimension_semantics = [#tpu.dimension_semantics<parallel>], iteration_bounds = array<i64: 2>, scalar_prefetch = 0 : i64, scratch_operands = 0 : i64, tpu.core_type = #tpu.core_type<tc>, window_params = [{transform_indices = @transform_0, window_bounds = array<i64: 1, 8, 32>}, {transform_indices = @transform_1, window_bounds = array<i64: 1, 48, 32>}, {transform_indices = @transform_2, window_bounds = array<i64: 1, 1, 48>}, {pipeline_mode = #tpu.pipeline_mode<synchronous>, transform_indices = @transform_3, window_bounds = array<i64: 32, 32>}, {pipeline_mode = #tpu.pipeline_mode<synchronous>, transform_indices = @transform_4, window_bounds = array<i64: 32, 32>}, {pipeline_mode = #tpu.pipeline_mode<synchronous>, transform_indices = @transform_5, window_bounds = array<i64: 32, 32>}, {pipeline_mode = #tpu.pipeline_mode<synchronous>, transform_indices = @transform_6, window_bounds = array<i64: 32, 32>}, {pipeline_mode = #tpu.pipeline_mode<synchronous>, transform_indices = @transform_7, window_bounds = array<i64: 1, 128>}, {transform_indices = @transform_8, window_bounds = array<i64: 1, 8, 128>}]} {
    %c0 = arith.constant 0 : index
    %c0_0 = arith.constant 0 : index
    %c0_1 = arith.constant 0 : index
    %0 = vector.load %arg1[%c0, %c0_0, %c0_1] : memref<1x8x32xf32, #tpu.memory_space<vmem>>, vector<1x8x32xf32>
    %1 = vector.shape_cast %0 : vector<1x8x32xf32> to vector<8x32xf32>
    %2 = arith.truncf %1 : vector<8x32xf32> to vector<8x32xbf16>
    %c0_2 = arith.constant 0 : index
    %c0_3 = arith.constant 0 : index
    %c0_4 = arith.constant 0 : index
    %3 = vector.load %arg2[%c0_2, %c0_3, %c0_4] : memref<1x48x32xf32, #tpu.memory_space<vmem>>, vector<1x48x32xf32>
    %4 = vector.shape_cast %3 : vector<1x48x32xf32> to vector<48x32xf32>
    %5 = arith.truncf %4 : vector<48x32xf32> to vector<48x32xbf16>
    %c0_5 = arith.constant 0 : index
    %c0_6 = arith.constant 0 : index
    %c0_7 = arith.constant 0 : index
    %6 = vector.load %arg3[%c0_5, %c0_6, %c0_7] : memref<1x1x48xf32, #tpu.memory_space<vmem>>, vector<1x1x48xf32>
    %7 = vector.shape_cast %6 : vector<1x1x48xf32> to vector<1x48xf32>
    %cst = arith.constant -1.000000e+04 : f32
    %8 = vector.broadcast %cst : f32 to vector<1x48xf32>
    %9 = arith.mulf %7, %8 : vector<1x48xf32>
    %c0_8 = arith.constant 0 : index
    %c0_9 = arith.constant 0 : index
    %10 = vector.load %arg4[%c0_8, %c0_9] : memref<32x32xf32, #tpu.memory_space<vmem>>, vector<32x32xf32>
    %c0_10 = arith.constant 0 : index
    %c0_11 = arith.constant 0 : index
    %11 = vector.load %arg5[%c0_10, %c0_11] : memref<32x32xbf16, #tpu.memory_space<vmem>>, vector<32x32xbf16>
    %cst_12 = arith.constant dense<0.000000e+00> : vector<8x32xf32>
    %12 = tpu.matmul %2, %11, %cst_12 {dimension_numbers = #tpu.dot_dimension_numbers<[1], [0], [0], [1], [0, 0, 1, 1], [], []>} : vector<8x32xbf16>, vector<32x32xbf16>, vector<8x32xf32> -> vector<8x32xf32>
    %c0_13 = arith.constant 0 : index
    %c0_14 = arith.constant 0 : index
    %13 = vector.load %arg6[%c0_13, %c0_14] : memref<32x32xbf16, #tpu.memory_space<vmem>>, vector<32x32xbf16>
    %cst_15 = arith.constant dense<0.000000e+00> : vector<48x32xf32>
    %14 = tpu.matmul %5, %13, %cst_15 {dimension_numbers = #tpu.dot_dimension_numbers<[1], [0], [0], [1], [0, 0, 1, 1], [], []>} : vector<48x32xbf16>, vector<32x32xbf16>, vector<48x32xf32> -> vector<48x32xf32>
    %15 = vector.shape_cast %12 : vector<8x32xf32> to vector<1x8x32xf32>
    %16 = vector.shape_cast %15 : vector<1x8x32xf32> to vector<1x8x32xf32>
    %17 = vector.broadcast %16 : vector<1x8x32xf32> to vector<4x8x32xf32>
    %18 = vector.shape_cast %17 : vector<4x8x32xf32> to vector<32x32xf32>
    %19 = arith.mulf %18, %10 : vector<32x32xf32>
    %20 = arith.truncf %19 : vector<32x32xf32> to vector<32x32xbf16>
    %21 = arith.truncf %14 : vector<48x32xf32> to vector<48x32xbf16>
    %cst_16 = arith.constant dense<0.000000e+00> : vector<32x48xf32>
    %22 = tpu.matmul %20, %21, %cst_16 {dimension_numbers = #tpu.dot_dimension_numbers<[1], [1], [0], [0], [0, 0, 1, 0], [], []>} : vector<32x32xbf16>, vector<48x32xbf16>, vector<32x48xf32> -> vector<32x48xf32>
    %cst_17 = arith.constant 0.353553385 : f32
    %23 = vector.broadcast %cst_17 : f32 to vector<32x48xf32>
    %24 = arith.mulf %22, %23 : vector<32x48xf32>
    %25 = vector.broadcast %9 : vector<1x48xf32> to vector<32x48xf32>
    %26 = arith.addf %24, %25 : vector<32x48xf32>
    %c0_18 = arith.constant 0 : index
    %c0_19 = arith.constant 0 : index
    %27 = vector.load %arg7[%c0_18, %c0_19] : memref<32x32xbf16, #tpu.memory_space<vmem>>, vector<32x32xbf16>
    %28 = vector.extract_strided_slice %26 {offsets = [0, 0], sizes = [32, 16], strides = [1, 1]} : vector<32x48xf32> to vector<32x16xf32>
    %cst_20 = arith.constant dense<0xFF800000> : vector<32xf32>
    %29 = vector.multi_reduction <maximumf>, %28, %cst_20 [1] : vector<32x16xf32> to vector<32xf32>
    %30 = vector.shape_cast %29 : vector<32xf32> to vector<32x1xf32>
    %31 = vector.broadcast %30 : vector<32x1xf32> to vector<32x16xf32>
    %32 = arith.subf %28, %31 : vector<32x16xf32>
    %33 = math.exp %32 : vector<32x16xf32>
    %cst_21 = arith.constant dense<0.000000e+00> : vector<32xf32>
    %34 = vector.multi_reduction <add>, %33, %cst_21 [1] : vector<32x16xf32> to vector<32xf32>
    %35 = vector.shape_cast %34 : vector<32xf32> to vector<32x1xf32>
    %36 = vector.broadcast %35 : vector<32x1xf32> to vector<32x16xf32>
    %37 = arith.divf %33, %36 : vector<32x16xf32>
    %38 = vector.extract_strided_slice %21 {offsets = [0, 0], sizes = [16, 32], strides = [1, 1]} : vector<48x32xbf16> to vector<16x32xbf16>
    %39 = arith.truncf %37 : vector<32x16xf32> to vector<32x16xbf16>
    %cst_22 = arith.constant dense<0.000000e+00> : vector<32x32xf32>
    %40 = tpu.matmul %39, %38, %cst_22 {dimension_numbers = #tpu.dot_dimension_numbers<[1], [0], [0], [1], [0, 0, 1, 1], [], []>} : vector<32x16xbf16>, vector<16x32xbf16>, vector<32x32xf32> -> vector<32x32xf32>
    %41 = arith.mulf %40, %10 : vector<32x32xf32>
    %42 = vector.extract_strided_slice %41 {offsets = [0, 0], sizes = [8, 32], strides = [1, 1]} : vector<32x32xf32> to vector<8x32xf32>
    %43 = vector.extract_strided_slice %41 {offsets = [8, 0], sizes = [8, 32], strides = [1, 1]} : vector<32x32xf32> to vector<8x32xf32>
    %44 = arith.addf %42, %43 : vector<8x32xf32>
    %45 = vector.extract_strided_slice %41 {offsets = [16, 0], sizes = [8, 32], strides = [1, 1]} : vector<32x32xf32> to vector<8x32xf32>
    %46 = arith.addf %44, %45 : vector<8x32xf32>
    %47 = vector.extract_strided_slice %41 {offsets = [24, 0], sizes = [8, 32], strides = [1, 1]} : vector<32x32xf32> to vector<8x32xf32>
    %48 = arith.addf %46, %47 : vector<8x32xf32>
    %49 = arith.truncf %48 : vector<8x32xf32> to vector<8x32xbf16>
    %cst_23 = arith.constant dense<0.000000e+00> : vector<8x32xf32>
    %50 = tpu.matmul %49, %27, %cst_23 {dimension_numbers = #tpu.dot_dimension_numbers<[1], [0], [0], [1], [0, 0, 1, 1], [], []>} : vector<8x32xbf16>, vector<32x32xbf16>, vector<8x32xf32> -> vector<8x32xf32>
    %51 = vector.extract_strided_slice %26 {offsets = [0, 16], sizes = [32, 16], strides = [1, 1]} : vector<32x48xf32> to vector<32x16xf32>
    %cst_24 = arith.constant dense<0xFF800000> : vector<32xf32>
    %52 = vector.multi_reduction <maximumf>, %51, %cst_24 [1] : vector<32x16xf32> to vector<32xf32>
    %53 = vector.shape_cast %52 : vector<32xf32> to vector<32x1xf32>
    %54 = vector.broadcast %53 : vector<32x1xf32> to vector<32x16xf32>
    %55 = arith.subf %51, %54 : vector<32x16xf32>
    %56 = math.exp %55 : vector<32x16xf32>
    %cst_25 = arith.constant dense<0.000000e+00> : vector<32xf32>
    %57 = vector.multi_reduction <add>, %56, %cst_25 [1] : vector<32x16xf32> to vector<32xf32>
    %58 = vector.shape_cast %57 : vector<32xf32> to vector<32x1xf32>
    %59 = vector.broadcast %58 : vector<32x1xf32> to vector<32x16xf32>
    %60 = arith.divf %56, %59 : vector<32x16xf32>
    %61 = vector.extract_strided_slice %21 {offsets = [16, 0], sizes = [16, 32], strides = [1, 1]} : vector<48x32xbf16> to vector<16x32xbf16>
    %62 = arith.truncf %60 : vector<32x16xf32> to vector<32x16xbf16>
    %cst_26 = arith.constant dense<0.000000e+00> : vector<32x32xf32>
    %63 = tpu.matmul %62, %61, %cst_26 {dimension_numbers = #tpu.dot_dimension_numbers<[1], [0], [0], [1], [0, 0, 1, 1], [], []>} : vector<32x16xbf16>, vector<16x32xbf16>, vector<32x32xf32> -> vector<32x32xf32>
    %64 = arith.mulf %63, %10 : vector<32x32xf32>
    %65 = vector.extract_strided_slice %64 {offsets = [0, 0], sizes = [8, 32], strides = [1, 1]} : vector<32x32xf32> to vector<8x32xf32>
    %66 = vector.extract_strided_slice %64 {offsets = [8, 0], sizes = [8, 32], strides = [1, 1]} : vector<32x32xf32> to vector<8x32xf32>
    %67 = arith.addf %65, %66 : vector<8x32xf32>
    %68 = vector.extract_strided_slice %64 {offsets = [16, 0], sizes = [8, 32], strides = [1, 1]} : vector<32x32xf32> to vector<8x32xf32>
    %69 = arith.addf %67, %68 : vector<8x32xf32>
    %70 = vector.extract_strided_slice %64 {offsets = [24, 0], sizes = [8, 32], strides = [1, 1]} : vector<32x32xf32> to vector<8x32xf32>
    %71 = arith.addf %69, %70 : vector<8x32xf32>
    %72 = arith.truncf %71 : vector<8x32xf32> to vector<8x32xbf16>
    %cst_27 = arith.constant dense<0.000000e+00> : vector<8x32xf32>
    %73 = tpu.matmul %72, %27, %cst_27 {dimension_numbers = #tpu.dot_dimension_numbers<[1], [0], [0], [1], [0, 0, 1, 1], [], []>} : vector<8x32xbf16>, vector<32x32xbf16>, vector<8x32xf32> -> vector<8x32xf32>
    %74 = vector.extract_strided_slice %26 {offsets = [0, 32], sizes = [32, 16], strides = [1, 1]} : vector<32x48xf32> to vector<32x16xf32>
    %cst_28 = arith.constant dense<0xFF800000> : vector<32xf32>
    %75 = vector.multi_reduction <maximumf>, %74, %cst_28 [1] : vector<32x16xf32> to vector<32xf32>
    %76 = vector.shape_cast %75 : vector<32xf32> to vector<32x1xf32>
    %77 = vector.broadcast %76 : vector<32x1xf32> to vector<32x16xf32>
    %78 = arith.subf %74, %77 : vector<32x16xf32>
    %79 = math.exp %78 : vector<32x16xf32>
    %cst_29 = arith.constant dense<0.000000e+00> : vector<32xf32>
    %80 = vector.multi_reduction <add>, %79, %cst_29 [1] : vector<32x16xf32> to vector<32xf32>
    %81 = vector.shape_cast %80 : vector<32xf32> to vector<32x1xf32>
    %82 = vector.broadcast %81 : vector<32x1xf32> to vector<32x16xf32>
    %83 = arith.divf %79, %82 : vector<32x16xf32>
    %84 = vector.extract_strided_slice %21 {offsets = [32, 0], sizes = [16, 32], strides = [1, 1]} : vector<48x32xbf16> to vector<16x32xbf16>
    %85 = arith.truncf %83 : vector<32x16xf32> to vector<32x16xbf16>
    %cst_30 = arith.constant dense<0.000000e+00> : vector<32x32xf32>
    %86 = tpu.matmul %85, %84, %cst_30 {dimension_numbers = #tpu.dot_dimension_numbers<[1], [0], [0], [1], [0, 0, 1, 1], [], []>} : vector<32x16xbf16>, vector<16x32xbf16>, vector<32x32xf32> -> vector<32x32xf32>
    %87 = arith.mulf %86, %10 : vector<32x32xf32>
    %88 = vector.extract_strided_slice %87 {offsets = [0, 0], sizes = [8, 32], strides = [1, 1]} : vector<32x32xf32> to vector<8x32xf32>
    %89 = vector.extract_strided_slice %87 {offsets = [8, 0], sizes = [8, 32], strides = [1, 1]} : vector<32x32xf32> to vector<8x32xf32>
    %90 = arith.addf %88, %89 : vector<8x32xf32>
    %91 = vector.extract_strided_slice %87 {offsets = [16, 0], sizes = [8, 32], strides = [1, 1]} : vector<32x32xf32> to vector<8x32xf32>
    %92 = arith.addf %90, %91 : vector<8x32xf32>
    %93 = vector.extract_strided_slice %87 {offsets = [24, 0], sizes = [8, 32], strides = [1, 1]} : vector<32x32xf32> to vector<8x32xf32>
    %94 = arith.addf %92, %93 : vector<8x32xf32>
    %95 = arith.truncf %94 : vector<8x32xf32> to vector<8x32xbf16>
    %cst_31 = arith.constant dense<0.000000e+00> : vector<8x32xf32>
    %96 = tpu.matmul %95, %27, %cst_31 {dimension_numbers = #tpu.dot_dimension_numbers<[1], [0], [0], [1], [0, 0, 1, 1], [], []>} : vector<8x32xbf16>, vector<32x32xbf16>, vector<8x32xf32> -> vector<8x32xf32>
    %cst_32 = arith.constant 0.000000e+00 : f32
    %97 = vector.broadcast %cst_32 : f32 to vector<8x32xf32>
    %98 = tpu.concatenate %50, %73, %96, %97 in 1 : vector<8x32xf32>, vector<8x32xf32>, vector<8x32xf32>, vector<8x32xf32> -> vector<8x128xf32>
    %c0_33 = arith.constant 0 : index
    %c0_34 = arith.constant 0 : index
    %99 = vector.load %arg8[%c0_33, %c0_34] : memref<1x128xf32, #tpu.memory_space<vmem>>, vector<1x128xf32>
    %100 = vector.broadcast %99 : vector<1x128xf32> to vector<8x128xf32>
    %101 = arith.addf %98, %100 : vector<8x128xf32>
    %102 = vector.shape_cast %101 : vector<8x128xf32> to vector<1x8x128xf32>
    %c0_35 = arith.constant 0 : index
    %c0_36 = arith.constant 0 : index
    %c0_37 = arith.constant 0 : index
    %103 = vector.load %arg9[%c0_35, %c0_36, %c0_37] : memref<1x8x128xf32, #tpu.memory_space<vmem>>, vector<1x8x128xf32>
    tpu.vector_store %arg9[%c0_35, %c0_36, %c0_37], %102 {strides = array<i32>} : memref<1x8x128xf32, #tpu.memory_space<vmem>>, vector<1x8x128xf32>,
    return
  }
  func.func @transform_0(%arg0: i32) -> (i32, i32, i32) {
    %c0_i32 = arith.constant 0 : i32
    %c0_i32_0 = arith.constant 0 : i32
    %c0_i32_1 = arith.constant 0 : i32
    return %arg0, %c0_i32, %c0_i32_0 : i32, i32, i32
  }
  func.func @transform_1(%arg0: i32) -> (i32, i32, i32) {
    %c0_i32 = arith.constant 0 : i32
    %c0_i32_0 = arith.constant 0 : i32
    %c0_i32_1 = arith.constant 0 : i32
    return %arg0, %c0_i32, %c0_i32_0 : i32, i32, i32
  }
  func.func @transform_2(%arg0: i32) -> (i32, i32, i32) {
    %c0_i32 = arith.constant 0 : i32
    %c0_i32_0 = arith.constant 0 : i32
    %c0_i32_1 = arith.constant 0 : i32
    return %arg0, %c0_i32, %c0_i32_0 : i32, i32, i32
  }
  func.func @transform_3(%arg0: i32) -> (i32, i32) {
    %c0_i32 = arith.constant 0 : i32
    %c0_i32_0 = arith.constant 0 : i32
    %c0_i32_1 = arith.constant 0 : i32
    return %c0_i32, %c0_i32_0 : i32, i32
  }
  func.func @transform_4(%arg0: i32) -> (i32, i32) {
    %c0_i32 = arith.constant 0 : i32
    %c0_i32_0 = arith.constant 0 : i32
    %c0_i32_1 = arith.constant 0 : i32
    return %c0_i32, %c0_i32_0 : i32, i32
  }
  func.func @transform_5(%arg0: i32) -> (i32, i32) {
    %c0_i32 = arith.constant 0 : i32
    %c0_i32_0 = arith.constant 0 : i32
    %c0_i32_1 = arith.constant 0 : i32
    return %c0_i32, %c0_i32_0 : i32, i32
  }
  func.func @transform_6(%arg0: i32) -> (i32, i32) {
    %c0_i32 = arith.constant 0 : i32
    %c0_i32_0 = arith.constant 0 : i32
    %c0_i32_1 = arith.constant 0 : i32
    return %c0_i32, %c0_i32_0 : i32, i32
  }
  func.func @transform_7(%arg0: i32) -> (i32, i32) {
    %c0_i32 = arith.constant 0 : i32
    %c0_i32_0 = arith.constant 0 : i32
    %c0_i32_1 = arith.constant 0 : i32
    return %c0_i32, %c0_i32_0 : i32, i32
  }
  func.func @transform_8(%arg0: i32) -> (i32, i32, i32) {
    %c0_i32 = arith.constant 0 : i32
    %c0_i32_0 = arith.constant 0 : i32
    %c0_i32_1 = arith.constant 0 : i32
    return %arg0, %c0_i32, %c0_i32_0 : i32, i32, i32
  }
}

</mosaic_0001>

<bundles_post_ra>
// kernel: tpu_custom_call.1
= control target key start
LH: loop header
LB: loop body
LE: loop exit
PB: predicated region body
PF: predicated region fallthrough
CT: control target
= control target key end

     0   :  { %13 = vsyncpa [#allocation3], 0  ;;  %s1902_s0 = inlined_call_operand.vmem [shape: f32[2,8,32], index: 0, kind: input, shape index: {}]   ;;  %s1903_s1 = inlined_call_operand.vmem [shape: f32[2,48,32], index: 1, kind: input, shape index: {}]   ;;  %s1904_s2 = inlined_call_operand.vmem [shape: f32[2,1,48], index: 2, kind: input, shape index: {}]   ;;  %s1905_s3 = inlined_call_operand.vmem [shape: f32[32,32], index: 3, kind: input, shape index: {}]   ;;  %s1906_s4 = inlined_call_operand.vmem [shape: bf16[32,32], index: 4, kind: input, shape index: {}]   ;;  %s1907_s5 = inlined_call_operand.vmem [shape: bf16[32,32], index: 5, kind: input, shape index: {}]   ;;  %s1908_s6 = inlined_call_operand.vmem [shape: bf16[32,32], index: 6, kind: input, shape index: {}]   ;;  %s1909_s7 = inlined_call_operand.vmem [shape: f32[1,128], index: 7, kind: input, shape index: {}]   ;;  %s1910_s8 = inlined_call_operand.hbm [shape: f32[2,8,128], index: 8, kind: output, shape index: {}]  }
   0x1   :  { %15 = vsyncpa [#allocation3 + $0x1], 0  ;;  %s1576_s27 = smov 0   ;;  %s1578_s28 = smov 0  }
   0x2   :  { %s1580_s29 = smov 0   ;;  %s1582_s30 = smov 0  }
   0x3 LB: > { %s1597_s9 = sadd.s32 4294967295, %s1522_s30   ;;  %s1217_s10 = sadd.s32 4294967294, %s1522_s30   ;;  %s1522_s30 = sphi %s1582_s30, %s1916_s30   ;;  %s1518_s29 = sphi %s1580_s29, %s1915_s29   ;;  %s1514_s28 = sphi %s1578_s28, %s1914_s28   ;;  %s1510_s27 = sphi %s1576_s27, %s1913_s27  }
   0x4   : > { %s1601_s11 = sadd.s32 1, %s1522_s30   ;;  %s211_s12 = sadd.s32 1, %s1518_s29 }
   0x5   : > { %s208_s13 = ssub.s32 %s1522_s30, %s1601_s11  ;;  %p221_p0 = scmp.ne.s32.totalorder %s1518_s29, %s1514_s28 }
   0x6   : > { %p209_p1 = scmp.eq.s32.totalorder %s208_s13, 0  ;;  %p222_p2 = scmp.eq.s32.totalorder %s1597_s9, 1 }
   0x7   : > { %p227_p3 = scmp.ne.s32.totalorder %s1514_s28, %s1510_s27  ;;  %p228_p4 = scmp.eq.s32.totalorder %s1217_s10, 1 }
   0x8   : > { %s1612_s14 = scalar_select %p209_p1, %s1518_s29, %s211_s12  }
   0x9   : > { %p1614_p5 = por %p222_p2, %p221_p0  ;;  %p1618_p6 = por %p228_p4, %p227_p3 }
   0xa   : > { %p1220_p7 = scmp.ge.s32.totalorder %s1522_s30, 1  ;;  %p282_p8 = scmp.lt.s32.totalorder %s1522_s30, 3 }
   0xc   : > { %p283_p9 = pnand %p1220_p7, %p282_p8 }
   0xd   : > { %v1406_v0 = vld [vmem:[%s1907_s5] sm:$0xff] (!%p283_p9)   ;;  %v1524_v1 = vmov (!%p283_p9), 0.0   ;;  %v1407_v2 = vld [vmem:[%s1907_s5 + $0x8] sm:$0xff] (!%p283_p9)   ;;  %vm1525_vm0 = vmmov (!%p283_p9), 0   ;;  %p323_p10 = scmp.lt.s32.totalorder (!%p283_p9), %s1597_s9, 1  ;;  %vm369_vm1 = vcmask (!%p283_p9), 261120   ;;  %v573_v48 = vlaneseq (!%p283_p9) }
   0xe   : > { %286 = sbr.rel (%p283_p9) target bundleno = 1630 (0x65e), region = 52  ;;  %1289 = vmatprep.subr.bf16.mxu1 (!%p283_p9), %v1524_v1  ;;  %1281 = vmatprep.subr.bf16.mxu0 (!%p283_p9), %v1524_v1  ;;  %v1408_v3 = vld [vmem:[%s1906_s4] sm:$0xff] (!%p283_p9)   ;;  %v1409_v4 = vld [vmem:[%s1906_s4 + $0x8] sm:$0xff] (!%p283_p9)   ;;  %v1689_v40 = vld [vmem:[%s1905_s3 + $0x10] sm:$0xff] (!%p283_p9)  ;;  %vm751_vm2 = vcmask (!%p283_p9), 261248   ;;  %vm926_vm3 = vcmask (!%p283_p9), 392448  }
   0xf   : > { %1290 = vmatpush3.bf16.msra.mxu1 (!%p283_p9), %v1406_v0  ;;  %1293 = vmatprep.mubr.msk.bf16.mxu1 (!%p283_p9), %vm1525_vm0, %v1524_v1  ;;  %v1667_v16 = vld [vmem:[%s1905_s3] sm:$0xff] (!%p283_p9)  ;;  %v1672_v17 = vld [vmem:[%s1905_s3 + $0x8] sm:$0xff] (!%p283_p9)  ;;  %v1694_v41 = vld [vmem:[%s1905_s3 + $0x18] sm:$0xff] (!%p283_p9)  ;;  %v574_v49 = vshrl.u32 (!%p283_p9), %v573_v48, 7  ;;  %vm586_vm4 = vcmask (!%p283_p9), 130048   ;;  %s320_s12 = sand.u32 (!%p283_p9), 1, %s1514_s28  }
  0x10   : > { %1291 = vmatprep.subr.bf16.mxu1 (!%p283_p9), %v1524_v1  ;;  %1285 = vmatprep.mubr.msk.bf16.mxu0 (!%p283_p9), %vm1525_vm0, %v1524_v1  ;;  %s1221_s13 = sshll.u32 (!%p283_p9), %s320_s12, 3  ;;  %vm1110_vm5 = vcmask (!%p283_p9), 523264   ;;  %vm1112_vm6 = vcmask (!%p283_p9), 785408   ;;  %s1124_s25 = scalar_lea.sflag (!%p283_p9), [#allocation3], %s320_s12 }
  0x11   : > { %1282 = vmatpush3.bf16.msra.mxu0 (!%p283_p9), %v1408_v3  ;;  %v575_v52 = vsub.s32 (!%p283_p9), 0, %v574_v49 }
  0x12   : > { %1283 = vmatprep.subr.bf16.mxu0 (!%p283_p9), %v1524_v1 }
  0x13   : > { %1292 = vmatpush3.bf16.msra.mxu1 (!%p283_p9), %v1407_v2 }
  0x15   : > { %s1642_s23 = scalar_select %p323_p10, %s1597_s9, 1  ;;  %1284 = vmatpush3.bf16.msra.mxu0 %v1409_v4 }
  0x17   : > { %s1360_s26 = smul.u32 48, %s1642_s23  ;;  %s1222_s10 = sshll.u32 %s1642_s23, 3 }
  0x18   : > { %s326_s17 = scalar_lea.vmem %s1902_s0, %s1222_s10  ;;  %s334_s19 = scalar_lea.vmem %s1904_s2, %s1642_s23 }
  0x19   : > { %s331_s20 = scalar_lea.vmem %s1903_s1, %s1360_s26  ;;  %v336_v5 = vld [vmem:[%s326_s17] sm:$0xff]  ;;  %s1526_s23 = smov 112  }
  0x1a   : > { %v338_v6 = vld [vmem:[%s331_s20] sm:$0xff]  ;;  %v339_v7 = vld [vmem:[%s331_s20 + $0x8] sm:$0xff]  ;;  %v337_v8 = vpack.c.bf16 %v336_v5, %v336_v5  ;;  %v340_v10 = vld [vmem:[%s331_s20 + $0x10] sm:$0xff]  ;;  %s1528_s26 = smov 32   ;;  %s1529_s10 = smov 64  }
  0x1b   : > { %v344_v9 = vpack.c.bf16 %v339_v7, %v338_v6  ;;  %v341_v11 = vld [vmem:[%s331_s20 + $0x18] sm:$0xff]  ;;  %v342_v13 = vld [vmem:[%s331_s20 + $0x20] sm:$0xff]  ;;  %v343_v14 = vld [vmem:[%s331_s20 + $0x28] sm:$0xff]  ;;  %s1527_s20 = smov 96  }
  0x1c   : > { %1286 = vmatmul.mubr.msk.bf16.vlgmr.msra.gmra.mrb[0].mxu0 %vm369_vm1, %v337_v8  ;;  %v345_v12 = vpack.c.bf16 %v341_v11, %v340_v10  ;;  %v346_v15 = vpack.c.bf16 %v343_v14, %v342_v13  ;;  %v347_v50 = vld [vmem:[%s334_s19] sm:$0x1]  ;;  %s1247_s19 = sshll.u32 %s1597_s9, 7  ;;  %s1530_s9 = smov [#allocation2]  }
  0x1d   : > { %1294 = vmatmul.mubr.msk.bf16.vlgmr.msra.gmra.mrb[0].mxu1 %vm369_vm1, %v344_v9  ;;  %v348_v51 = vmul.f32 -10000.0, %v347_v50  ;;  %s1860_s24 = scalar_lea.hbm %s1910_s8, %s1247_s19 }
  0x1e   : > { %1297 = vmatprep.mubr.msk.bf16.mxu1 %vm1525_vm0, %v1524_v1 }
  0x1f   : > { %v576_v53 = vrot.slane %v348_v51, %v575_v52 }
  0x25   : > { %1298 = vmatmul.mubr.msk.bf16.gmra.mrb[4].mxu1 %vm369_vm1, %v345_v12 }
  0x26   : > { %1301 = vmatprep.mubr.msk.bf16.mxu1 %vm1525_vm0, %v1524_v1 }
  0x2d   : > { %1302 = vmatmul.mubr.msk.bf16.gmra.mrb[8].mxu1 %vm369_vm1, %v346_v15 }
  0xef   : > { %v407_v19 = vpop.f32.mrb[0].mxu0 }
  0xf0   : > { %v472_v18 = vpop.f32.mrb[0].mxu1  ;;  %v495_v21 = vmul.f32 %v407_v19, %v1667_v16  ;;  %v496_v22 = vmul.f32 %v407_v19, %v1672_v17  ;;  %v1287_v23 = vpop.f32.mrb[1].mxu0  ;;  %v497_v44 = vmul.f32 %v407_v19, %v1689_v40  ;;  %v498_v45 = vmul.f32 %v407_v19, %v1694_v41 }
  0xf1   : > { %v1295_v20 = vpop.f32.mrb[1].mxu1  ;;  %v410_v25 = vpop.f32.mrb[2].mxu0 }
  0xf2   : > { %v475_v24 = vpop.f32.mrb[2].mxu1  ;;  %v1288_v28 = vpop.f32.mrb[3].mxu0  ;;  %v499_v29 = vpack.c.bf16 %v496_v22, %v495_v21  ;;  %v500_v47 = vpack.c.bf16 %v498_v45, %v497_v44 }
  0xf3   : > { %v501_v26 = vpack.c.bf16 %v475_v24, %v472_v18  ;;  %v1296_v27 = vpop.f32.mrb[3].mxu1 }
  0xf4   : > { %1311 = vmatprep.mubr.msk.bf16.mxu0 %vm369_vm1, %v499_v29 }
  0xf5   : > { %1357 = vmatprep.subr.msk.bf16.mxu0 %vm369_vm1, %v501_v26  ;;  %1315 = vmatprep.subr.bf16.mxu1 %v501_v26  ;;  %v511_v30 = vsel %vm369_vm1, %v501_v26, 0 }
  0xf6   : > { %1306 = vmatpush3.bf16.xpose.msra.mxu0 %v511_v30  ;;  %1316 = vmatpush3.bf16.msra.mxu1 %v501_v26 }
  0xf8   : > { %v480_v31 = vpop.f32.mrb[4].mxu1 }
  0xf9   : > { %v1299_v32 = vpop.f32.mrb[5].mxu1 }
  0xfa   : > { %v483_v33 = vpop.f32.mrb[6].mxu1 }
  0xfb   : > { %v1679_v34 = vpack.c.bf16 %v483_v33, %v480_v31  ;;  %v1300_v35 = vpop.f32.mrb[7].mxu1 }
  0xfd   : > { %1358 = vmatprep.subr.msk.bf16.mxu0 %vm369_vm1, %v1679_v34  ;;  %1329 = vmatprep.subr.bf16.mxu1 %v1679_v34  ;;  %v514_v36 = vsel %vm369_vm1, %v1679_v34, 0 }
  0xfe   : > { %1308 = vmatpush3.bf16.xpose.msra.mxu0 %v514_v36 }
 0x100   : > { %v488_v37 = vpop.f32.mrb[8].mxu1 }
 0x101   : > { %v1303_v38 = vpop.f32.mrb[9].mxu1 }
 0x102   : > { %v491_v39 = vpop.f32.mrb[10].mxu1 }
 0x103   : > { %v1696_v42 = vpack.c.bf16 %v491_v39, %v488_v37  ;;  %v1304_v43 = vpop.f32.mrb[11].mxu1 }
 0x105   : > { %1359 = vmatprep.subr.msk.bf16.mxu0 %vm369_vm1, %v1696_v42  ;;  %v517_v46 = vsel %vm369_vm1, %v1696_v42, 0 }
 0x106   : > { %1310 = vmatpush3.bf16.xpose.msra.mxu0 %v517_v46 }
 0x107   : > { %1321 = vmatprep.subr.bf16.mxu0 %v1524_v1 }
 0x10d   : > { %1312 = vmatmul.mubr.msk.bf16.vlgmr.msra.gmra.mrb[4].mxu0 %vm369_vm1, %v500_v47 }
 0x10e   : > { %1325 = vmatprep.mubr.msk.bf16.mxu0 %vm1525_vm0, %v1524_v1 }
 0x1e0   : > { %v1313_v54 = vpop.f32.mrb[4].mxu0 }
 0x1e1   : > { %v570_v55 = vmul.f32 0.35355338, %v1313_v54  ;;  %v553_v56 = vpop.f32.mrb[5].mxu0 }
 0x1e2   : > { %v568_v57 = vmul.f32 0.35355338, %v553_v56  ;;  %v1314_v58 = vpop.f32.mrb[6].mxu0 }
 0x1e3   : > { %v1712_v59 = vadd.f32 %v576_v53, %v570_v55  ;;  %v571_v60 = vmul.f32 0.35355338, %v1314_v58  ;;  %v556_v61 = vpop.f32.mrb[7].mxu0 }
 0x1e4   : > { %v1714_v62 = vadd.f32 %v576_v53, %v568_v57  ;;  %v569_v63 = vmul.f32 0.35355338, %v556_v61 }
 0x1e5   : > { %v1716_v0 = vadd.f32 %v576_v53, %v571_v60  ;;  %v758_v2 = vsel %vm751_vm2, %v1712_v59, -inf  ;;  %v933_v10 = vsel %vm926_vm3, %v1712_v59, -inf  ;;  %v593_v50 = vsel %vm586_vm4, %v1712_v59, -inf }
 0x1e6   : > { %v1719_v3 = vadd.f32 %v576_v53, %v569_v63  ;;  %759 = vmax.xlane.f32.xlu1 %v758_v2  ;;  %v752_v4 = vsel %vm751_vm2, %v1714_v62, -inf  ;;  %v927_v8 = vsel %vm926_vm3, %v1714_v62, -inf  ;;  %v587_v11 = vsel %vm586_vm4, %v1714_v62, -inf }
 0x1e7   : > { %753 = vmax.xlane.f32.xlu0 %v752_v4  ;;  %v761_v5 = vsel %vm751_vm2, %v1716_v0, -inf  ;;  %v936_v9 = vsel %vm926_vm3, %v1716_v0, -inf  ;;  %v596_v51 = vsel %vm586_vm4, %v1716_v0, -inf }
 0x1e8   : > { %v755_v6 = vsel %vm751_vm2, %v1719_v3, -inf  ;;  %v930_v7 = vsel %vm926_vm3, %v1719_v3, -inf  ;;  %v590_v52 = vsel %vm586_vm4, %v1719_v3, -inf }
 0x1ea   : > { %762 = vmax.xlane.f32.xlu1 %v761_v5 }
 0x1eb   : > { %756 = vmax.xlane.f32.xlu0 %v755_v6 }
 0x1ee   : > { %931 = vmax.xlane.f32.xlu1 %v930_v7 }
 0x1ef   : > { %928 = vmax.xlane.f32.xlu0 %v927_v8 }
 0x1f2   : > { %937 = vmax.xlane.f32.xlu1 %v936_v9 }
 0x1f3   : > { %934 = vmax.xlane.f32.xlu0 %v933_v10 }
 0x1f7   : > { %588 = vmax.xlane.f32.xlu0 %v587_v11 }
 0x273   : > { %v760_v12 = vpop.xlane.xlu1 %759 }
 0x274   : > { %v766_v13 = vsub.f32 %v1712_v59, %v760_v12  ;;  %v754_v14 = vpop.xlane.xlu0 %753 }
 0x275   : > { %v764_v28 = vsub.f32 %v1714_v62, %v754_v14 }
 0x276   : > { %v772_v15 = vmul.f32 1.442695, %v766_v13 }
 0x277   : > { %v763_v18 = vpop.xlane.xlu1 %762  ;;  %v768_v36 = vmul.f32 1.442695, %v764_v28 }
 0x278   : > { %1412 = vpow2.f32 %v772_v15  ;;  %v767_v19 = vsub.f32 %v1716_v0, %v763_v18  ;;  %v757_v20 = vpop.xlane.xlu0 %756 }
 0x279   : > { %v765_v25 = vsub.f32 %v1719_v3, %v757_v20 }
 0x27a   : > { %v774_v21 = vmul.f32 1.442695, %v767_v19 }
 0x27b   : > { %v932_v22 = vpop.xlane.xlu1 %931  ;;  %v770_v33 = vmul.f32 1.442695, %v765_v25 }
 0x27c   : > { %1414 = vpow2.f32 %v774_v21  ;;  %v929_v23 = vpop.xlane.xlu0 %928  ;;  %v940_v35 = vsub.f32 %v1719_v3, %v932_v22 }
 0x27d   : > { %v939_v37 = vsub.f32 %v1714_v62, %v929_v23 }
 0x27e   : > { %v945_v39 = vmul.f32 1.442695, %v940_v35 }
 0x27f   : > { %v938_v24 = vpop.xlane.xlu1 %937  ;;  %v943_v43 = vmul.f32 1.442695, %v939_v37 }
 0x280   : > { %v942_v26 = vsub.f32 %v1716_v0, %v938_v24  ;;  %v935_v27 = vpop.xlane.xlu0 %934 }
 0x281   : > { %v941_v29 = vsub.f32 %v1712_v59, %v935_v27 }
 0x282   : > { %v1736_v30 = vpop.eup %1412  ;;  %v949_v31 = vmul.f32 1.442695, %v942_v26 }
 0x283   : > { %v947_v32 = vmul.f32 1.442695, %v941_v29  ;;  %784 = vrot.lane.b32.xlu1 %v1736_v30, %s1526_s23 }
 0x284   : > { %1416 = vpow2.f32 %v949_v31  ;;  %v589_v55 = vpop.xlane.xlu0 %588 }
 0x285   : > { %1418 = vpow2.f32 %v947_v32  ;;  %v599_v57 = vsub.f32 %v1714_v62, %v589_v55 }
 0x286   : > { %v1742_v38 = vpop.eup %1414  ;;  %1420 = vpow2.f32 %v770_v33 }
 0x287   : > { %786 = vrot.lane.b32.xlu1 %v1742_v38, %s1526_s23  ;;  %1422 = vpow2.f32 %v768_v36  ;;  %v603_v61 = vmul.f32 1.442695, %v599_v57 }
 0x288   : > { %1424 = vpow2.f32 %v945_v39 }
 0x289   : > { %1426 = vpow2.f32 %v943_v43 }
 0x28a   : > { %1428 = vpow2.f32 %v603_v61 }
 0x28e   : > { %v1746_v44 = vpop.eup %1416 }
 0x28f   : > { %v1748_v45 = vpop.eup %1418  ;;  %961 = vrot.lane.b32.xlu1 %v1746_v44, %s1527_s20 }
 0x290   : > { %959 = vrot.lane.b32.xlu0 %v1748_v45, %s1527_s20  ;;  %v1754_v46 = vpop.eup %1420 }
 0x291   : > { %v1756_v47 = vpop.eup %1422 }
 0x292   : > { %v1762_v48 = vpop.eup %1424 }
 0x293   : > { %782 = vrot.lane.b32.xlu1 %v1754_v46, %s1526_s23  ;;  %v1764_v49 = vpop.eup %1426 }
 0x294   : > { %780 = vrot.lane.b32.xlu0 %v1756_v47, %s1526_s23  ;;  %v1785_v12 = vpop.eup %1428 }
 0x295   : > { %v611_v13 = vsel %vm586_vm4, %v1785_v12, 0.0 }
 0x297   : > { %957 = vrot.lane.b32.xlu1 %v1762_v48, %s1527_s20 }
 0x298   : > { %955 = vrot.lane.b32.xlu0 %v1764_v49, %s1527_s20 }
 0x2b7   : > { %594 = vmax.xlane.f32.xlu0 %v593_v50 }
 0x2bb   : > { %597 = vmax.xlane.f32.xlu0 %v596_v51  ;;  %591 = vmax.xlane.f32.xlu1 %v590_v52 }
 0x2f5   : > { %v785_v53 = vpop.permute.xlu1 %784 }
 0x2f6   : > { %v798_v7 = vsel %vm586_vm4, %v785_v53, 0.0 }
 0x2f9   : > { %v787_v54 = vpop.permute.xlu1 %786 }
 0x2fa   : > { %v801_v5 = vsel %vm586_vm4, %v787_v54, 0.0 }
 0x301   : > { %v962_v56 = vpop.permute.xlu1 %961 }
 0x302   : > { %v960_v58 = vpop.permute.xlu0 %959  ;;  %v976_v10 = vsel %vm586_vm4, %v962_v56, 0.0 }
 0x303   : > { %v973_v11 = vsel %vm586_vm4, %v960_v58, 0.0 }
 0x305   : > { %v783_v60 = vpop.permute.xlu1 %782 }
 0x306   : > { %v781_v63 = vpop.permute.xlu0 %780  ;;  %v795_v2 = vsel %vm586_vm4, %v783_v60, 0.0 }
 0x307   : > { %796 = vadd.xlane.f32.xlu1 %v795_v2  ;;  %v792_v4 = vsel %vm586_vm4, %v781_v63, 0.0 }
 0x308   : > { %793 = vadd.xlane.f32.xlu0 %v792_v4 }
 0x309   : > { %v958_v6 = vpop.permute.xlu1 %957 }
 0x30a   : > { %v956_v8 = vpop.permute.xlu0 %955  ;;  %v970_v62 = vsel %vm586_vm4, %v958_v6, 0.0 }
 0x30b   : > { %802 = vadd.xlane.f32.xlu1 %v801_v5  ;;  %v967_v9 = vsel %vm586_vm4, %v956_v8, 0.0 }
 0x30c   : > { %799 = vadd.xlane.f32.xlu0 %v798_v7 }
 0x30f   : > { %971 = vadd.xlane.f32.xlu1 %v970_v62 }
 0x310   : > { %968 = vadd.xlane.f32.xlu0 %v967_v9 }
 0x313   : > { %977 = vadd.xlane.f32.xlu1 %v976_v10 }
 0x314   : > { %974 = vadd.xlane.f32.xlu0 %v973_v11 }
 0x318   : > { %612 = vadd.xlane.f32.xlu0 %v611_v13 }
 0x344   : > { %v595_v14 = vpop.xlane.xlu0 %594 }
 0x345   : > { %v601_v15 = vsub.f32 %v1712_v59, %v595_v14 }
 0x347   : > { %v607_v18 = vmul.f32 1.442695, %v601_v15 }
 0x348   : > { %v598_v19 = vpop.xlane.xlu0 %597  ;;  %v592_v20 = vpop.xlane.xlu1 %591 }
 0x349   : > { %1430 = vpow2.f32 %v607_v18  ;;  %v602_v21 = vsub.f32 %v1716_v0, %v598_v19  ;;  %v600_v22 = vsub.f32 %v1719_v3, %v592_v20  ;;  %v1411_v20 = vld [vmem:[%s1908_s6 + $0x8] sm:$0xff]  }
 0x34b   : > { %v605_v23 = vmul.f32 1.442695, %v600_v22  ;;  %v609_v24 = vmul.f32 1.442695, %v602_v21 }
 0x34d   : > { %1432 = vpow2.f32 %v605_v23 }
 0x34e   : > { %1434 = vpow2.f32 %v609_v24 }
 0x353   : > { %v1792_v25 = vpop.eup %1430 }
 0x354   : > { %v617_v26 = vsel %vm586_vm4, %v1792_v25, 0.0 }
 0x355   : > { %618 = vadd.xlane.f32.xlu0 %v617_v26 }
 0x357   : > { %v1433_v27 = vpop.eup %1432 }
 0x358   : > { %v614_v59 = vsel %vm586_vm4, %v1433_v27, 0.0  ;;  %v1435_v28 = vpop.eup %1434 }
 0x359   : > { %615 = vadd.xlane.f32.xlu1 %v614_v59  ;;  %v620_v29 = vsel %vm586_vm4, %v1435_v28, 0.0 }
 0x35d   : > { %621 = vadd.xlane.f32.xlu1 %v620_v29 }
 0x394   : > { %v797_v0 = vpop.xlane.xlu1 %796 }
 0x395   : > { %1436 = vrcp.f32 %v797_v0  ;;  %v794_v3 = vpop.xlane.xlu0 %793 }
 0x396   : > { %1438 = vrcp.f32 %v794_v3 }
 0x398   : > { %v803_v31 = vpop.xlane.xlu1 %802 }
 0x399   : > { %1440 = vrcp.f32 %v803_v31  ;;  %v800_v32 = vpop.xlane.xlu0 %799 }
 0x39a   : > { %1442 = vrcp.f32 %v800_v32 }
 0x39c   : > { %v972_v33 = vpop.xlane.xlu1 %971 }
 0x39d   : > { %1444 = vrcp.f32 %v972_v33  ;;  %v969_v35 = vpop.xlane.xlu0 %968 }
 0x39e   : > { %1446 = vrcp.f32 %v969_v35 }
 0x39f   : > { %v1437_v36 = vpop.eup %1436 }
 0x3a0   : > { %v1439_v37 = vpop.eup %1438  ;;  %v978_v39 = vpop.xlane.xlu1 %977  ;;  %v807_v43 = vmul.f32 %v1437_v36, %v1754_v46 }
 0x3a1   : > { %1448 = vrcp.f32 %v978_v39  ;;  %v975_v50 = vpop.xlane.xlu0 %974  ;;  %v805_v51 = vmul.f32 %v1439_v37, %v1756_v47 }
 0x3a2   : > { %1450 = vrcp.f32 %v975_v50 }
 0x3a3   : > { %v1441_v52 = vpop.eup %1440  ;;  %v812_v53 = vpack.c.bf16 %v807_v43, %v805_v51 }
 0x3a4   : > { %v1443_v54 = vpop.eup %1442  ;;  %v811_v55 = vmul.f32 %v1441_v52, %v1742_v38 }
 0x3a5   : > { %816 = vrot.lane.b32.xlu0 %v812_v53, %s1526_s23  ;;  %v809_v56 = vmul.f32 %v1443_v54, %v1736_v30  ;;  %v613_v30 = vpop.xlane.xlu0 %612 }
 0x3a6   : > { %1452 = vrcp.f32 %v613_v30 }
 0x3a7   : > { %v1445_v57 = vpop.eup %1444  ;;  %v813_v58 = vpack.c.bf16 %v811_v55, %v809_v56 }
 0x3a8   : > { %v1447_v60 = vpop.eup %1446  ;;  %v982_v61 = vmul.f32 %v1445_v57, %v1762_v48 }
 0x3a9   : > { %818 = vrot.lane.b32.xlu1 %v813_v58, %s1526_s23  ;;  %v980_v46 = vmul.f32 %v1447_v60, %v1764_v49  ;;  %s322_s23 = scalar_lea.vmem [#allocation2], %s1221_s13 }
 0x3ab   : > { %v1449_v47 = vpop.eup %1448  ;;  %v987_v63 = vpack.c.bf16 %v982_v61, %v980_v46 }
 0x3ac   : > { %v1451_v2 = vpop.eup %1450  ;;  %v986_v4 = vmul.f32 %v1449_v47, %v1746_v44 }
 0x3ad   : > { %991 = vrot.lane.b32.xlu1 %v987_v63, %s1527_s20  ;;  %v984_v38 = vmul.f32 %v1451_v2, %v1748_v45 }
 0x3af   : > { %v988_v5 = vpack.c.bf16 %v986_v4, %v984_v38 }
 0x3b0   : > { %v1453_v49 = vpop.eup %1452 }
 0x3b1   : > { %993 = vrot.lane.b32.xlu1 %v988_v5, %s1527_s20  ;;  %v624_v62 = vmul.f32 %v1453_v49, %v1785_v12  ;;  %s1137_s20 = sshll.u32 %s322_s23, 4  ;;  %s1862_s20 = int_to_ptr.vmem [resolvable:$true] %s1137_s20 }
 0x3e2   : > { %v619_v6 = vpop.xlane.xlu0 %618 }
 0x3e6   : > { %v616_v48 = vpop.xlane.xlu1 %615 }
 0x3e7   : > { %1454 = vrcp.f32 %v616_v48 }
 0x3e8   : > { %1456 = vrcp.f32 %v619_v6 }
 0x3ea   : > { %v622_v7 = vpop.xlane.xlu1 %621 }
 0x3eb   : > { %1458 = vrcp.f32 %v622_v7 }
 0x3f1   : > { %v1455_v8 = vpop.eup %1454 }
 0x3f2   : > { %v626_v44 = vmul.f32 %v1455_v8, %v1433_v27  ;;  %v1457_v9 = vpop.eup %1456 }
 0x3f3   : > { %v628_v45 = vmul.f32 %v1457_v9, %v1792_v25 }
 0x3f4   : > { %v631_v10 = vpack.c.bf16 %v626_v44, %v624_v62  ;;  %v1245_v62 = vld [vmem:[%s1909_s7] ss:$0 sm:$0xff] }
 0x3f5   : > { %v1459_v11 = vpop.eup %1458 }
 0x3f6   : > { %v630_v13 = vmul.f32 %v1459_v11, %v1435_v28  ;;  %1317 = vmatprep.mubr.msk.bf16.mxu1 %vm586_vm4, %v631_v10 }
 0x3f8   : > { %v632_v14 = vpack.c.bf16 %v630_v13, %v628_v45 }
 0x3fa   : > { %1318 = vmatmul.mubr.msk.bf16.vlgmr.msra.gmra.mrb[12].mxu1 %vm586_vm4, %v632_v14 }
 0x3fb   : > { %1330 = vmatpush3.bf16.msra.mxu1 %v1679_v34  ;;  %v1410_v34 = vld [vmem:[%s1908_s6] sm:$0xff]  }
 0x3fc   : > { %1343 = vmatprep.subr.bf16.mxu1 %v1696_v42  ;;  %1322 = vmatpush3.bf16.msra.mxu0 %v1410_v34 }
 0x3fd   : > { %1323 = vmatprep.subr.bf16.mxu0 %v1524_v1 }
 0x400   : > { %1324 = vmatpush3.bf16.msra.mxu0 %v1411_v20 }
 0x401   : > { %1335 = vmatprep.subr.bf16.mxu0 %v1524_v1 }
 0x417   : > { %v817_v15 = vpop.permute.xlu0 %816 }
 0x418   : > { %1331 = vmatprep.mubr.msk.bf16.mxu1 %vm586_vm4, %v817_v15 }
 0x41b   : > { %v819_v12 = vpop.permute.xlu1 %818 }
 0x41c   : > { %1332 = vmatmul.mubr.msk.bf16.vlgmr.msra.gmra.mrb[16].mxu1 %vm586_vm4, %v819_v12 }
 0x41d   : > { %1344 = vmatpush3.bf16.msra.mxu1 %v1696_v42 }
 0x41f   : > { %v992_v18 = vpop.permute.xlu1 %991 }
 0x420   : > { %1345 = vmatprep.mubr.msk.bf16.mxu1 %vm586_vm4, %v992_v18 }
 0x423   : > { %v994_v19 = vpop.permute.xlu1 %993 }
 0x424   : > { %1346 = vmatmul.mubr.msk.bf16.vlgmr.msra.gmra.mrb[20].mxu1 %vm586_vm4, %v994_v19 }
 0x4cd   : > { %v1319_v42 = vpop.f32.mrb[12].mxu1 }
 0x4ce   : > { %v673_v21 = vpop.f32.mrb[13].mxu1  ;;  %v690_v26 = vmul.f32 %v1319_v42, %v1689_v40 }
 0x4cf   : > { %v1320_v22 = vpop.f32.mrb[14].mxu1  ;;  %v688_v24 = vmul.f32 %v673_v21, %v1667_v16 }
 0x4d0   : > { %v676_v23 = vpop.f32.mrb[15].mxu1  ;;  %v691_v59 = vmul.f32 %v1320_v22, %v1694_v41 }
 0x4d1   : > { %v689_v25 = vmul.f32 %v676_v23, %v1672_v17 }
 0x4d3   : > { %v692_v27 = vadd.f32 %v689_v25, %v688_v24 }
 0x4d5   : > { %v693_v28 = vadd.f32 %v692_v27, %v690_v26 }
 0x4d7   : > { %v694_v29 = vadd.f32 %v693_v28, %v691_v59 }
 0x4d9   : > { %v695_v0 = vpack.c.bf16 %v694_v29, %v694_v29 }
 0x4db   : > { %1326 = vmatmul.mubr.msk.bf16.vlgmr.msra.gmra.mrb[8].mxu0 %vm369_vm1, %v695_v0 }
 0x4dc   : > { %1336 = vmatpush3.bf16.msra.mxu0 %v1410_v34  ;;  %1339 = vmatprep.mubr.msk.bf16.mxu0 %vm1525_vm0, %v1524_v1 }
 0x4dd   : > { %1337 = vmatprep.subr.bf16.mxu0 %v1524_v1 }
 0x4e0   : > { %1338 = vmatpush3.bf16.msra.mxu0 %v1411_v20 }
 0x4e1   : > { %1349 = vmatprep.subr.bf16.mxu0 %v1524_v1 }
 0x4ef   : > { %v1333_v3 = vpop.f32.mrb[16].mxu1 }
 0x4f0   : > { %v860_v31 = vpop.f32.mrb[17].mxu1  ;;  %v877_v37 = vmul.f32 %v1333_v3, %v1689_v40 }
 0x4f1   : > { %v1334_v32 = vpop.f32.mrb[18].mxu1  ;;  %v875_v35 = vmul.f32 %v860_v31, %v1667_v16 }
 0x4f2   : > { %v863_v33 = vpop.f32.mrb[19].mxu1  ;;  %v878_v43 = vmul.f32 %v1334_v32, %v1694_v41 }
 0x4f3   : > { %v876_v36 = vmul.f32 %v863_v33, %v1672_v17 }
 0x4f5   : > { %v879_v39 = vadd.f32 %v876_v36, %v875_v35 }
 0x4f7   : > { %v880_v50 = vadd.f32 %v879_v39, %v877_v37  ;;  %v1347_v51 = vpop.f32.mrb[20].mxu1 }
 0x4f8   : > { %v1035_v52 = vpop.f32.mrb[21].mxu1  ;;  %v1052_v60 = vmul.f32 %v1347_v51, %v1689_v40 }
 0x4f9   : > { %v881_v53 = vadd.f32 %v880_v50, %v878_v43  ;;  %v1348_v54 = vpop.f32.mrb[22].mxu1  ;;  %v1050_v57 = vmul.f32 %v1035_v52, %v1667_v16 }
 0x4fa   : > { %v1038_v55 = vpop.f32.mrb[23].mxu1  ;;  %v1053_v46 = vmul.f32 %v1348_v54, %v1694_v41 }
 0x4fb   : > { %v882_v56 = vpack.c.bf16 %v881_v53, %v881_v53  ;;  %v1051_v58 = vmul.f32 %v1038_v55, %v1672_v17 }
 0x4fd   : > { %v1054_v61 = vadd.f32 %v1051_v58, %v1050_v57  ;;  %1340 = vmatmul.mubr.msk.bf16.vlgmr.msra.gmra.mrb[12].mxu0 %vm369_vm1, %v882_v56 }
 0x4fe   : > { %1350 = vmatpush3.bf16.msra.mxu0 %v1410_v34  ;;  %1353 = vmatprep.mubr.msk.bf16.mxu0 %vm1525_vm0, %v1524_v1 }
 0x4ff   : > { %v1055_v47 = vadd.f32 %v1054_v61, %v1052_v60  ;;  %1351 = vmatprep.subr.bf16.mxu0 %v1524_v1 }
 0x501   : > { %v1056_v63 = vadd.f32 %v1055_v47, %v1053_v46 }
 0x502   : > { %1352 = vmatpush3.bf16.msra.mxu0 %v1411_v20 }
 0x503   : > { %v1057_v2 = vpack.c.bf16 %v1056_v63, %v1056_v63 }
 0x505   : > { %1354 = vmatmul.mubr.msk.bf16.vlgmr.msra.gmra.mrb[16].mxu0 %vm369_vm1, %v1057_v2 }
 0x5ae   : > { %v745_v16 = vpop.f32.mrb[8].mxu0 }
 0x5af   : > { %v1327_v17 = vpop.f32.mrb[9].mxu0 }
 0x5b0   : > { %v748_v40 = vpop.f32.mrb[10].mxu0 }
 0x5b1   : > { %v1328_v4 = vpop.f32.mrb[11].mxu0 }
 0x5d0   : > { %v920_v38 = vpop.f32.mrb[12].mxu0 }
 0x5d1   : > { %1102 = vrot.lane.b32.xlu0 %v920_v38, %s1528_s26  ;;  %v1341_v5 = vpop.f32.mrb[13].mxu0  ;;  %s1460_s26 = scalar_lea.vmem %s1862_s20, 128 }
 0x5d2   : > { %v923_v30 = vpop.f32.mrb[14].mxu0  ;;  %p1461_p11 = scmp.ne.s32.totalorder %s1862_s20, %s1460_s26 }
 0x5d3   : > { %v1342_v41 = vpop.f32.mrb[15].mxu0 }
 0x5d4   : > { %p1462_p12 = pnand %p1461_p11, %p1614_p5 }
 0x5d6   : > { %p1463_p13 = pneg %p1462_p12 }
 0x5d8   : > { %v1095_v6 = vpop.f32.mrb[16].mxu0 }
 0x5d9   : > { %1106 = vrot.lane.b32.xlu1 %v1095_v6, %s1529_s10  ;;  %v1355_v1 = vpop.f32.mrb[17].mxu0  ;;  %s1464_s10 = sshll.u32 %s1530_s9, 4  ;;  %s1465_s10 = int_to_ptr.vmem [resolvable:$false] %s1464_s10 }
 0x5da   : > { %v1098_v48 = vpop.f32.mrb[18].mxu0  ;;  %s1466_s13 = scalar_lea.vmem %s1465_s10, 256  ;;  %p1467_p0 = scmp.lt.s32.totalorder %s1862_s20, %s1465_s10 }
 0x5db   : > { %v1356_v7 = vpop.f32.mrb[19].mxu0  ;;  %p1468_p1 = scmp.lt.s32.totalorder %s1466_s13, %s1460_s26 }
 0x5dd   : > { %p1469_p2 = por %p1468_p1, %p1467_p0 }
 0x5df   : > { %p1470_p3 = pnand %p1469_p2, %p1463_p13 }
 0x643   : > { %v1103_v49 = vpop.permute.xlu0 %1102 }
 0x644   : > { %v1109_v8 = vsel %vm369_vm1, %v745_v16, %v1103_v49 }
 0x64b   : > { %v1107_v44 = vpop.permute.xlu1 %1106 }
 0x64c   : > { %v1111_v9 = vsel %vm1110_vm5, %v1109_v8, %v1107_v44 }
 0x64d   : > { %v1113_v10 = vsel %vm1112_vm6, %v1111_v9, 0.0 }
 0x64e   : > { %v1121_v11 = vadd.f32 %v1245_v62, %v1113_v10 }
 0x650   : > { %1122 = vst [vmem:[%s322_s23] sm:$0xff] %v1121_v11 }
 0x651   : > { %1473 = shalt.err (!%p1470_p3)
}
 0x652   : > { %s1474_s12 = scalar_lea.hbm %s1860_s24, 128  ;;  %s1478_s19 = scalar_lea.hbm %s1910_s8, 256 }
 0x653   : > { %p1475_p4 = scmp.ne.s32.totalorder %s1860_s24, %s1474_s12  ;;  %p1479_p9 = scmp.lt.u32.totalorder %s1860_s24, %s1910_s8 }
 0x654   : > { %p1480_p10 = scmp.lt.u32.totalorder %s1478_s19, %s1474_s12  ;;  %p1482_p12 = scmp.lt.u32.totalorder %s1474_s12, %s1860_s24 }
 0x655   : > { %p1476_p7 = pnand %p1475_p4, %p1614_p5 }
 0x656   : > { %p1481_p11 = por %p1480_p10, %p1479_p9 }
 0x657   : > { %p1477_p8 = pneg %p1476_p7 }
 0x658   : > { %p1483_p13 = por %p1482_p12, %p1481_p11 }
 0x65a   : > { %p1484_p0 = pnand %p1483_p13, %p1477_p8 }
 0x65c   : > { %1487 = shalt.err (!%p1484_p0)
}
 0x65d   : > { %1361 = dma.vmem_to_hbm [thread:$0]  (%p1614_p5), %s1862_s20, 128, %s1860_s24, %s1124_s25  }
 0x65e PF: > { %p1367_p1 = scmp.ge.s32.totalorder %s1522_s30, 2  ;;  %s1149_s22 = sand.u32 1, %s1510_s27  }
 0x65f   : > { %s1150_s26 = scalar_lea.sflag [#allocation3], %s1149_s22 }
 0x660   : > { %p1364_p2 = pnand %p1367_p1, %p1618_p6 }
 0x662   : > { %1505 = dma.done.wait (!%p1364_p2), %s1150_s26, 128  }
 0x663   : > { %1507 = vsyncadd (!%p1364_p2), %s1150_s26, 4294967168  ;;  %p18_p3 = scmp.ge.s32.totalorder %s1601_s11, 4   ;;  %s1913_s27 = smov %s1514_s28 }
 0x664   : > { %s1914_s28 = smov %s1518_s29  ;;  %s1915_s29 = smov %s1612_s14 }
 0x665   : > { %s1916_s30 = smov %s1601_s11  ;;  %20 = sbr.rel (!%p18_p3) target bundleno = 3 (0x3), region = 93 }
 0x66c   :  { %1155 = vsyncpa [#allocation3], 1 }
 0x66d   :  { %1157 = vsyncpa [#allocation3 + $0x1], 1 }

</bundles_post_ra>
